<compile_context>
chip_gen: v7x
topology: tpu7x:2x2x1
jax: 0.10.0
libtpu: 0.0.40
codegen_flags: <defaults>
</compile_context>

<pallas_src>
import functools

import jax
import jax.numpy as jnp
from jax import lax
from jax.experimental import pallas as pl
from jax.experimental.pallas import tpu as pltpu


# ------------------------------------------------------------------------
# Fused kernel: projections + multi-head attention + fc_out for one
# (batch, q-block) tile.  K/V projections cached in VMEM scratch per batch.
# ------------------------------------------------------------------------
def _mha_fused_kernel(q_ref, k_ref, v_ref, wqkv_ref, wo_ref, b_ref, o_ref,
                      kp_scr, vp_scr, cat_scr, *, heads, hd, scale, cache_kv):
    E = heads * hd

    def project_kv():
        k2d = k_ref[0]                                   # (Lk, E) bf16
        v2d = v_ref[0]                                   # (Lv, E) bf16
        kp_scr[...] = jnp.dot(
            k2d, wqkv_ref[:, E:2 * E],
            preferred_element_type=jnp.float32).astype(jnp.bfloat16)
        vp_scr[...] = jnp.dot(
            v2d, wqkv_ref[:, 2 * E:3 * E],
            preferred_element_type=jnp.float32).astype(jnp.bfloat16)

    if cache_kv:
        # K/V only change with the batch index (outer grid axis); recompute
        # their projections only on the first q-block of each batch element.
        @pl.when(pl.program_id(1) == 0)
        def _():
            project_kv()
    else:
        project_kv()

    # Q projection: lane-dense (block_q, E) x (E, E) block-diagonal matmul,
    # softmax scale applied in f32 before the bf16 cast.
    q2d = q_ref[0]                                       # (block_q, E) bf16
    qp = (jnp.dot(q2d, wqkv_ref[:, 0:E],
                  preferred_element_type=jnp.float32) * scale
          ).astype(jnp.bfloat16)                         # (block_q, E)

    # Per-head attention.  Each head's output is written immediately into its
    # lane slice of cat_scr so its intermediates (energy/p) die right away.
    for h in range(heads):                               # static unrolled loop
        sl = slice(h * hd, (h + 1) * hd)
        qh = qp[:, sl]                                   # (block_q, hd) bf16
        kh = kp_scr[:, sl]                               # (Lk, hd) bf16
        vh = vp_scr[:, sl]                               # (Lk, hd) bf16

        # energy = q_scaled @ k^T, f32 accumulation.
        energy = lax.dot_general(
            qh, kh, (((1,), (1,)), ((), ())),
            preferred_element_type=jnp.float32)          # (block_q, Lk)

        # Numerically stable softmax; stats stay in f32.
        m = jnp.max(energy, axis=-1, keepdims=True)
        p = jnp.exp(energy - m)
        denom = jnp.sum(p, axis=-1, keepdims=True)

        # PV matmul first, then normalize the (block_q, hd) tile (cheaper than
        # scaling the (block_q, Lk) probabilities); reciprocal on the EUP.
        o_h = jnp.dot(p.astype(jnp.bfloat16), vh,
                      preferred_element_type=jnp.float32)  # (block_q, hd) f32
        o_h = o_h * pl.reciprocal(denom, approx=True)
        cat_scr[:, sl] = o_h.astype(jnp.bfloat16)

    # Fused fc_out: y = concat @ W_out^T + b  (W_out pre-transposed on host).
    y = jnp.dot(cat_scr[...], wo_ref[...],
                preferred_element_type=jnp.float32) + b_ref[...]
    o_ref[0] = y.astype(o_ref.dtype)


# ------------------------------------------------------------------------
# Host-side weight packing (do once, reuse across calls)
# ------------------------------------------------------------------------
def pack_mha_params(params, heads):
    """Pre-pack nn.Linear weights into kernel-friendly layouts (call once)."""
    wq, wk, wv, w_out, b_out = params
    hd = wq.shape[0]
    E = hd * heads
    eye = jnp.eye(heads, dtype=jnp.float32)

    def block_diag(w):                      # per-head x_h @ w.T, block-diagonal on E
        return jnp.kron(eye, w.T)           # (E, E)

    w_qkv = jnp.concatenate(
        [block_diag(wq), block_diag(wk), block_diag(wv)], axis=1
    ).astype(jnp.bfloat16)                                      # (E, 3E)
    w_out_t = w_out.T.astype(jnp.bfloat16)                      # (E, E)
    b_out2d = b_out.reshape(1, E).astype(jnp.float32)           # (1, E)
    return w_qkv, w_out_t, b_out2d


def _pick_block_q(Lq):
    for cand in (512, 256, 128):
        if Lq % cand == 0:
            return cand
    if Lq <= 512:
        return Lq
    raise ValueError(
        f"query_len={Lq} is neither a multiple of 128 nor <= 512; pad the "
        "query sequence so q-tiling can bound the VMEM footprint.")


def _vmem_limit_bytes():
    try:
        kind = jax.devices()[0].device_kind.lower()
    except Exception:
        return None
    if "v7" in kind:
        return 56 * 1024 * 1024      # leave headroom under v7x's 64 MiB VMEM
    if "v5" in kind or "v6" in kind:
        return 100 * 1024 * 1024     # 128 MiB physical on v5e/v6e
    return None                      # unknown generation: keep compiler default


# ------------------------------------------------------------------------
# Wrapper
# ------------------------------------------------------------------------
def multi_head_attention_packed(values, keys, queries, packed_params, heads,
                                out_dtype=jnp.float32):
    """Pallas MultiHeadAttention.forward (mask=None) using pre-packed weights."""
    w_qkv, w_out_t, b_out2d = packed_params

    N, Lq, E = queries.shape
    Lk, Lv = keys.shape[1], values.shape[1]
    assert Lk == Lv, "key_len must equal value_len (as required by the einsums)"
    hd = E // heads
    assert hd * heads == E
    scale = 1.0 / float(E) ** 0.5            # module divides by embed_size ** (1/2)

    block_q = _pick_block_q(Lq)
    n_q_blocks = Lq // block_q

    # Cache K/V projections across q-blocks (requires in-order qb axis).  When
    # N == 1, prefer exposing qb as parallel work (v7x has 2 TensorCores) and
    # recompute K/V per q-block instead.
    cache_kv = (n_q_blocks > 1) and (N > 1)
    qb_sem = "arbitrary" if cache_kv else "parallel"

    # bf16 activations: the MXU path is bf16 anyway; halves DMA + VMEM for the
    # full-length K/V blocks.
    q_in = queries.astype(jnp.bfloat16)
    k_in = keys.astype(jnp.bfloat16)
    v_in = values.astype(jnp.bfloat16)

    kernel = functools.partial(_mha_fused_kernel, heads=heads, hd=hd,
                               scale=scale, cache_kv=cache_kv)

    out = pl.pallas_call(
        kernel,
        out_shape=jax.ShapeDtypeStruct((N, Lq, E), out_dtype),
        grid_spec=pltpu.PrefetchScalarGridSpec(
            num_scalar_prefetch=0,
            grid=(N, n_q_blocks),
            in_specs=[
                pl.BlockSpec((1, block_q, E), lambda n, qb: (n, qb, 0)),  # q
                pl.BlockSpec((1, Lk, E), lambda n, qb: (n, 0, 0)),        # k
                pl.BlockSpec((1, Lv, E), lambda n, qb: (n, 0, 0)),        # v
                pl.BlockSpec((E, 3 * E), lambda n, qb: (0, 0)),           # blockdiag Wqkv
                pl.BlockSpec((E, E), lambda n, qb: (0, 0)),               # W_out^T
                pl.BlockSpec((1, E), lambda n, qb: (0, 0)),               # b_out
            ],
            out_specs=pl.BlockSpec((1, block_q, E), lambda n, qb: (n, qb, 0)),
            scratch_shapes=[
                pltpu.VMEM((Lk, E), jnp.bfloat16),       # cached projected K
                pltpu.VMEM((Lv, E), jnp.bfloat16),       # cached projected V
                pltpu.VMEM((block_q, E), jnp.bfloat16),  # per-head output concat
            ],
        ),
        compiler_params=pltpu.CompilerParams(
            dimension_semantics=("parallel", qb_sem),
            vmem_limit_bytes=_vmem_limit_bytes(),
        ),
    )(q_in, k_in, v_in, w_qkv, w_out_t, b_out2d)

    return out


def multi_head_attention(values, keys, queries, params, heads):
    """Convenience wrapper: packs weights then runs the fused kernel.

    For inference loops, call pack_mha_params() once and use
    multi_head_attention_packed() directly.
    """
    # TODO(synk): optional attention mask (masked_fill with -1e20) not implemented.
    packed = pack_mha_params(params, heads)
    return multi_head_attention_packed(values, keys, queries, packed, heads)


# ------------------------------------------------------------------------
# Pure-JAX f32 reference (mirrors the PyTorch forward exactly) for validation
# ------------------------------------------------------------------------
def _reference(values, keys, queries, params, heads):
    wq, wk, wv, w_out, b_out = params
    N, Lq, E = queries.shape
    Lk, Lv = keys.shape[1], values.shape[1]
    hd = E // heads
    v = values.reshape(N, Lv, heads, hd) @ wv.T
    k = keys.reshape(N, Lk, heads, hd) @ wk.T
    q = queries.reshape(N, Lq, heads, hd) @ wq.T
    energy = jnp.einsum("nqhd,nkhd->nhqk", q, k)
    attention = jax.nn.softmax(energy / float(E) ** 0.5, axis=3)
    out = jnp.einsum("nhql,nlhd->nqhd", attention, v).reshape(N, Lq, E)
    return out @ w_out.T + b_out


if __name__ == "__main__":
    base_key = jax.random.PRNGKey(0)

    def run_case(case_idx, N, Lq, Lk, E, heads):
        hd = E // heads
        key = jax.random.fold_in(base_key, case_idx)
        kq, kk, kv, k_wq, k_wk, k_wv, k_wo, k_bo = jax.random.split(key, 8)

        queries = jax.random.normal(kq, (N, Lq, E), dtype=jnp.float32)
        keys = jax.random.normal(kk, (N, Lk, E), dtype=jnp.float32)
        values = jax.random.normal(kv, (N, Lk, E), dtype=jnp.float32)

        # nn.Linear stores W as (out, in)
        wq = jax.random.normal(k_wq, (hd, hd), dtype=jnp.float32) * 0.1
        wk = jax.random.normal(k_wk, (hd, hd), dtype=jnp.float32) * 0.1
        wv = jax.random.normal(k_wv, (hd, hd), dtype=jnp.float32) * 0.1
        w_out = jax.random.normal(k_wo, (E, E), dtype=jnp.float32) * 0.1
        b_out = jax.random.normal(k_bo, (E,), dtype=jnp.float32) * 0.1
        params = (wq, wk, wv, w_out, b_out)

        packed = pack_mha_params(params, heads)          # pack once, reuse
        out = multi_head_attention_packed(values, keys, queries, packed, heads)
        out = jax.block_until_ready(out)

        ref = _reference(values, keys, queries, params, heads)
        assert out.shape == (N, Lq, E)
        # bf16 MXU inputs + approx reciprocal -> relaxed tolerance vs all-f32 ref.
        max_err = float(jnp.max(jnp.abs(out - ref)))
        assert jnp.allclose(out, ref, atol=5e-2, rtol=5e-2), (
            f"case {case_idx}: mismatch vs reference (max abs err {max_err:.4g})")

    # Small shapes consistent with the module.
    run_case(0, N=2, Lq=8, Lk=8, E=32, heads=4)
    # Exercise q-tiling + the cached-K/V path (block_q=128, n_q_blocks=3).
    run_case(1, N=2, Lq=384, Lk=256, E=128, heads=8)

    print("KERNEL_OK")
</pallas_src>

<mosaic_0001>
module attributes {stable_mosaic.version = 11 : i64} {
  func.func @_mha_fused_kernel(%arg0: i32, %arg1: i32, %arg2: memref<1x8x32xbf16, #tpu.memory_space<vmem>>, %arg3: memref<1x8x32xbf16, #tpu.memory_space<vmem>>, %arg4: memref<1x8x32xbf16, #tpu.memory_space<vmem>>, %arg5: memref<32x96xbf16, #tpu.memory_space<vmem>>, %arg6: memref<32x32xbf16, #tpu.memory_space<vmem>>, %arg7: memref<1x32xf32, #tpu.memory_space<vmem>>, %arg8: memref<1x8x32xf32, #tpu.memory_space<vmem>>, %arg9: memref<8x32xbf16, #tpu.memory_space<vmem>>, %arg10: memref<8x32xbf16, #tpu.memory_space<vmem>>, %arg11: memref<8x32xbf16, #tpu.memory_space<vmem>>) attributes {dimension_semantics = [#tpu.dimension_semantics<parallel>, #tpu.dimension_semantics<parallel>], iteration_bounds = array<i64: 2, 1>, scalar_prefetch = 0 : i64, scratch_operands = 3 : i64, tpu.core_type = #tpu.core_type<tc>, window_params = [{transform_indices = @transform_0, window_bounds = array<i64: 1, 8, 32>}, {transform_indices = @transform_1, window_bounds = array<i64: 1, 8, 32>}, {transform_indices = @transform_2, window_bounds = array<i64: 1, 8, 32>}, {pipeline_mode = #tpu.pipeline_mode<synchronous>, transform_indices = @transform_3, window_bounds = array<i64: 32, 96>}, {pipeline_mode = #tpu.pipeline_mode<synchronous>, transform_indices = @transform_4, window_bounds = array<i64: 32, 32>}, {pipeline_mode = #tpu.pipeline_mode<synchronous>, transform_indices = @transform_5, window_bounds = array<i64: 1, 32>}, {transform_indices = @transform_6, window_bounds = array<i64: 1, 8, 32>}]} {
    %c0 = arith.constant 0 : index
    %c0_0 = arith.constant 0 : index
    %c0_1 = arith.constant 0 : index
    %0 = vector.load %arg3[%c0, %c0_0, %c0_1] : memref<1x8x32xbf16, #tpu.memory_space<vmem>>, vector<1x8x32xbf16>
    %1 = vector.shape_cast %0 : vector<1x8x32xbf16> to vector<8x32xbf16>
    %c0_2 = arith.constant 0 : index
    %c0_3 = arith.constant 0 : index
    %c0_4 = arith.constant 0 : index
    %2 = vector.load %arg4[%c0_2, %c0_3, %c0_4] : memref<1x8x32xbf16, #tpu.memory_space<vmem>>, vector<1x8x32xbf16>
    %3 = vector.shape_cast %2 : vector<1x8x32xbf16> to vector<8x32xbf16>
    %c0_5 = arith.constant 0 : index
    %c32 = arith.constant 32 : index
    %4 = vector.load %arg5[%c0_5, %c32] : memref<32x96xbf16, #tpu.memory_space<vmem>>, vector<32x32xbf16>
    %cst = arith.constant dense<0.000000e+00> : vector<8x32xf32>
    %5 = tpu.matmul %1, %4, %cst {dimension_numbers = #tpu.dot_dimension_numbers<[1], [0], [0], [1], [0, 0, 1, 1], [], []>} : vector<8x32xbf16>, vector<32x32xbf16>, vector<8x32xf32> -> vector<8x32xf32>
    %6 = arith.truncf %5 : vector<8x32xf32> to vector<8x32xbf16>
    %c0_6 = arith.constant 0 : index
    %c0_7 = arith.constant 0 : index
    %7 = vector.load %arg9[%c0_6, %c0_7] : memref<8x32xbf16, #tpu.memory_space<vmem>>, vector<8x32xbf16>
    tpu.vector_store %arg9[%c0_6, %c0_7], %6 {strides = array<i32>} : memref<8x32xbf16, #tpu.memory_space<vmem>>, vector<8x32xbf16>,
    %c0_8 = arith.constant 0 : index
    %c64 = arith.constant 64 : index
    %8 = vector.load %arg5[%c0_8, %c64] : memref<32x96xbf16, #tpu.memory_space<vmem>>, vector<32x32xbf16>
    %cst_9 = arith.constant dense<0.000000e+00> : vector<8x32xf32>
    %9 = tpu.matmul %3, %8, %cst_9 {dimension_numbers = #tpu.dot_dimension_numbers<[1], [0], [0], [1], [0, 0, 1, 1], [], []>} : vector<8x32xbf16>, vector<32x32xbf16>, vector<8x32xf32> -> vector<8x32xf32>
    %10 = arith.truncf %9 : vector<8x32xf32> to vector<8x32xbf16>
    %c0_10 = arith.constant 0 : index
    %c0_11 = arith.constant 0 : index
    %11 = vector.load %arg10[%c0_10, %c0_11] : memref<8x32xbf16, #tpu.memory_space<vmem>>, vector<8x32xbf16>
    tpu.vector_store %arg10[%c0_10, %c0_11], %10 {strides = array<i32>} : memref<8x32xbf16, #tpu.memory_space<vmem>>, vector<8x32xbf16>,
    %c0_12 = arith.constant 0 : index
    %c0_13 = arith.constant 0 : index
    %c0_14 = arith.constant 0 : index
    %12 = vector.load %arg2[%c0_12, %c0_13, %c0_14] : memref<1x8x32xbf16, #tpu.memory_space<vmem>>, vector<1x8x32xbf16>
    %13 = vector.shape_cast %12 : vector<1x8x32xbf16> to vector<8x32xbf16>
    %c0_15 = arith.constant 0 : index
    %c0_16 = arith.constant 0 : index
    %14 = vector.load %arg5[%c0_15, %c0_16] : memref<32x96xbf16, #tpu.memory_space<vmem>>, vector<32x32xbf16>
    %cst_17 = arith.constant dense<0.000000e+00> : vector<8x32xf32>
    %15 = tpu.matmul %13, %14, %cst_17 {dimension_numbers = #tpu.dot_dimension_numbers<[1], [0], [0], [1], [0, 0, 1, 1], [], []>} : vector<8x32xbf16>, vector<32x32xbf16>, vector<8x32xf32> -> vector<8x32xf32>
    %cst_18 = arith.constant 0.176776692 : f32
    %16 = vector.broadcast %cst_18 : f32 to vector<8x32xf32>
    %17 = arith.mulf %15, %16 : vector<8x32xf32>
    %18 = arith.truncf %17 : vector<8x32xf32> to vector<8x32xbf16>
    %19 = vector.extract_strided_slice %18 {offsets = [0, 0], sizes = [8, 8], strides = [1, 1]} : vector<8x32xbf16> to vector<8x8xbf16>
    %c0_19 = arith.constant 0 : index
    %c0_20 = arith.constant 0 : index
    %20 = vector.load %arg9[%c0_19, %c0_20] : memref<8x32xbf16, #tpu.memory_space<vmem>>, vector<8x8xbf16>
    %c0_21 = arith.constant 0 : index
    %c0_22 = arith.constant 0 : index
    %21 = vector.load %arg10[%c0_21, %c0_22] : memref<8x32xbf16, #tpu.memory_space<vmem>>, vector<8x8xbf16>
    %cst_23 = arith.constant dense<0.000000e+00> : vector<8x8xf32>
    %22 = tpu.matmul %19, %20, %cst_23 {dimension_numbers = #tpu.dot_dimension_numbers<[1], [1], [0], [0], [0, 0, 1, 0], [], []>} : vector<8x8xbf16>, vector<8x8xbf16>, vector<8x8xf32> -> vector<8x8xf32>
    %cst_24 = arith.constant dense<0xFF800000> : vector<8xf32>
    %23 = vector.multi_reduction <maximumf>, %22, %cst_24 [1] : vector<8x8xf32> to vector<8xf32>
    %24 = vector.shape_cast %23 : vector<8xf32> to vector<8x1xf32>
    %25 = vector.broadcast %24 : vector<8x1xf32> to vector<8x8xf32>
    %26 = arith.subf %22, %25 : vector<8x8xf32>
    %27 = math.exp %26 : vector<8x8xf32>
    %cst_25 = arith.constant dense<0.000000e+00> : vector<8xf32>
    %28 = vector.multi_reduction <add>, %27, %cst_25 [1] : vector<8x8xf32> to vector<8xf32>
    %29 = vector.shape_cast %28 : vector<8xf32> to vector<8x1xf32>
    %30 = arith.truncf %27 : vector<8x8xf32> to vector<8x8xbf16>
    %cst_26 = arith.constant dense<0.000000e+00> : vector<8x8xf32>
    %31 = tpu.matmul %30, %21, %cst_26 {dimension_numbers = #tpu.dot_dimension_numbers<[1], [0], [0], [1], [0, 0, 1, 1], [], []>} : vector<8x8xbf16>, vector<8x8xbf16>, vector<8x8xf32> -> vector<8x8xf32>
    %32 = tpu.reciprocal %29 {approx = true} : vector<8x1xf32> -> vector<8x1xf32>
    %33 = vector.broadcast %32 : vector<8x1xf32> to vector<8x8xf32>
    %34 = arith.mulf %31, %33 : vector<8x8xf32>
    %35 = arith.truncf %34 : vector<8x8xf32> to vector<8x8xbf16>
    %c0_27 = arith.constant 0 : index
    %c0_28 = arith.constant 0 : index
    %36 = vector.load %arg11[%c0_27, %c0_28] : memref<8x32xbf16, #tpu.memory_space<vmem>>, vector<8x8xbf16>
    tpu.vector_store %arg11[%c0_27, %c0_28], %35 {strides = array<i32>} : memref<8x32xbf16, #tpu.memory_space<vmem>>, vector<8x8xbf16>,
    %37 = vector.extract_strided_slice %18 {offsets = [0, 8], sizes = [8, 8], strides = [1, 1]} : vector<8x32xbf16> to vector<8x8xbf16>
    %c0_29 = arith.constant 0 : index
    %c8 = arith.constant 8 : index
    %38 = vector.load %arg9[%c0_29, %c8] : memref<8x32xbf16, #tpu.memory_space<vmem>>, vector<8x8xbf16>
    %c0_30 = arith.constant 0 : index
    %c8_31 = arith.constant 8 : index
    %39 = vector.load %arg10[%c0_30, %c8_31] : memref<8x32xbf16, #tpu.memory_space<vmem>>, vector<8x8xbf16>
    %cst_32 = arith.constant dense<0.000000e+00> : vector<8x8xf32>
    %40 = tpu.matmul %37, %38, %cst_32 {dimension_numbers = #tpu.dot_dimension_numbers<[1], [1], [0], [0], [0, 0, 1, 0], [], []>} : vector<8x8xbf16>, vector<8x8xbf16>, vector<8x8xf32> -> vector<8x8xf32>
    %cst_33 = arith.constant dense<0xFF800000> : vector<8xf32>
    %41 = vector.multi_reduction <maximumf>, %40, %cst_33 [1] : vector<8x8xf32> to vector<8xf32>
    %42 = vector.shape_cast %41 : vector<8xf32> to vector<8x1xf32>
    %43 = vector.broadcast %42 : vector<8x1xf32> to vector<8x8xf32>
    %44 = arith.subf %40, %43 : vector<8x8xf32>
    %45 = math.exp %44 : vector<8x8xf32>
    %cst_34 = arith.constant dense<0.000000e+00> : vector<8xf32>
    %46 = vector.multi_reduction <add>, %45, %cst_34 [1] : vector<8x8xf32> to vector<8xf32>
    %47 = vector.shape_cast %46 : vector<8xf32> to vector<8x1xf32>
    %48 = arith.truncf %45 : vector<8x8xf32> to vector<8x8xbf16>
    %cst_35 = arith.constant dense<0.000000e+00> : vector<8x8xf32>
    %49 = tpu.matmul %48, %39, %cst_35 {dimension_numbers = #tpu.dot_dimension_numbers<[1], [0], [0], [1], [0, 0, 1, 1], [], []>} : vector<8x8xbf16>, vector<8x8xbf16>, vector<8x8xf32> -> vector<8x8xf32>
    %50 = tpu.reciprocal %47 {approx = true} : vector<8x1xf32> -> vector<8x1xf32>
    %51 = vector.broadcast %50 : vector<8x1xf32> to vector<8x8xf32>
    %52 = arith.mulf %49, %51 : vector<8x8xf32>
    %53 = arith.truncf %52 : vector<8x8xf32> to vector<8x8xbf16>
    %c0_36 = arith.constant 0 : index
    %c8_37 = arith.constant 8 : index
    %54 = vector.load %arg11[%c0_36, %c8_37] : memref<8x32xbf16, #tpu.memory_space<vmem>>, vector<8x8xbf16>
    tpu.vector_store %arg11[%c0_36, %c8_37], %53 {strides = array<i32>} : memref<8x32xbf16, #tpu.memory_space<vmem>>, vector<8x8xbf16>,
    %55 = vector.extract_strided_slice %18 {offsets = [0, 16], sizes = [8, 8], strides = [1, 1]} : vector<8x32xbf16> to vector<8x8xbf16>
    %c0_38 = arith.constant 0 : index
    %c16 = arith.constant 16 : index
    %56 = vector.load %arg9[%c0_38, %c16] : memref<8x32xbf16, #tpu.memory_space<vmem>>, vector<8x8xbf16>
    %c0_39 = arith.constant 0 : index
    %c16_40 = arith.constant 16 : index
    %57 = vector.load %arg10[%c0_39, %c16_40] : memref<8x32xbf16, #tpu.memory_space<vmem>>, vector<8x8xbf16>
    %cst_41 = arith.constant dense<0.000000e+00> : vector<8x8xf32>
    %58 = tpu.matmul %55, %56, %cst_41 {dimension_numbers = #tpu.dot_dimension_numbers<[1], [1], [0], [0], [0, 0, 1, 0], [], []>} : vector<8x8xbf16>, vector<8x8xbf16>, vector<8x8xf32> -> vector<8x8xf32>
    %cst_42 = arith.constant dense<0xFF800000> : vector<8xf32>
    %59 = vector.multi_reduction <maximumf>, %58, %cst_42 [1] : vector<8x8xf32> to vector<8xf32>
    %60 = vector.shape_cast %59 : vector<8xf32> to vector<8x1xf32>
    %61 = vector.broadcast %60 : vector<8x1xf32> to vector<8x8xf32>
    %62 = arith.subf %58, %61 : vector<8x8xf32>
    %63 = math.exp %62 : vector<8x8xf32>
    %cst_43 = arith.constant dense<0.000000e+00> : vector<8xf32>
    %64 = vector.multi_reduction <add>, %63, %cst_43 [1] : vector<8x8xf32> to vector<8xf32>
    %65 = vector.shape_cast %64 : vector<8xf32> to vector<8x1xf32>
    %66 = arith.truncf %63 : vector<8x8xf32> to vector<8x8xbf16>
    %cst_44 = arith.constant dense<0.000000e+00> : vector<8x8xf32>
    %67 = tpu.matmul %66, %57, %cst_44 {dimension_numbers = #tpu.dot_dimension_numbers<[1], [0], [0], [1], [0, 0, 1, 1], [], []>} : vector<8x8xbf16>, vector<8x8xbf16>, vector<8x8xf32> -> vector<8x8xf32>
    %68 = tpu.reciprocal %65 {approx = true} : vector<8x1xf32> -> vector<8x1xf32>
    %69 = vector.broadcast %68 : vector<8x1xf32> to vector<8x8xf32>
    %70 = arith.mulf %67, %69 : vector<8x8xf32>
    %71 = arith.truncf %70 : vector<8x8xf32> to vector<8x8xbf16>
    %c0_45 = arith.constant 0 : index
    %c16_46 = arith.constant 16 : index
    %72 = vector.load %arg11[%c0_45, %c16_46] : memref<8x32xbf16, #tpu.memory_space<vmem>>, vector<8x8xbf16>
    tpu.vector_store %arg11[%c0_45, %c16_46], %71 {strides = array<i32>} : memref<8x32xbf16, #tpu.memory_space<vmem>>, vector<8x8xbf16>,
    %73 = vector.extract_strided_slice %18 {offsets = [0, 24], sizes = [8, 8], strides = [1, 1]} : vector<8x32xbf16> to vector<8x8xbf16>
    %c0_47 = arith.constant 0 : index
    %c24 = arith.constant 24 : index
    %74 = vector.load %arg9[%c0_47, %c24] : memref<8x32xbf16, #tpu.memory_space<vmem>>, vector<8x8xbf16>
    %c0_48 = arith.constant 0 : index
    %c24_49 = arith.constant 24 : index
    %75 = vector.load %arg10[%c0_48, %c24_49] : memref<8x32xbf16, #tpu.memory_space<vmem>>, vector<8x8xbf16>
    %cst_50 = arith.constant dense<0.000000e+00> : vector<8x8xf32>
    %76 = tpu.matmul %73, %74, %cst_50 {dimension_numbers = #tpu.dot_dimension_numbers<[1], [1], [0], [0], [0, 0, 1, 0], [], []>} : vector<8x8xbf16>, vector<8x8xbf16>, vector<8x8xf32> -> vector<8x8xf32>
    %cst_51 = arith.constant dense<0xFF800000> : vector<8xf32>
    %77 = vector.multi_reduction <maximumf>, %76, %cst_51 [1] : vector<8x8xf32> to vector<8xf32>
    %78 = vector.shape_cast %77 : vector<8xf32> to vector<8x1xf32>
    %79 = vector.broadcast %78 : vector<8x1xf32> to vector<8x8xf32>
    %80 = arith.subf %76, %79 : vector<8x8xf32>
    %81 = math.exp %80 : vector<8x8xf32>
    %cst_52 = arith.constant dense<0.000000e+00> : vector<8xf32>
    %82 = vector.multi_reduction <add>, %81, %cst_52 [1] : vector<8x8xf32> to vector<8xf32>
    %83 = vector.shape_cast %82 : vector<8xf32> to vector<8x1xf32>
    %84 = arith.truncf %81 : vector<8x8xf32> to vector<8x8xbf16>
    %cst_53 = arith.constant dense<0.000000e+00> : vector<8x8xf32>
    %85 = tpu.matmul %84, %75, %cst_53 {dimension_numbers = #tpu.dot_dimension_numbers<[1], [0], [0], [1], [0, 0, 1, 1], [], []>} : vector<8x8xbf16>, vector<8x8xbf16>, vector<8x8xf32> -> vector<8x8xf32>
    %86 = tpu.reciprocal %83 {approx = true} : vector<8x1xf32> -> vector<8x1xf32>
    %87 = vector.broadcast %86 : vector<8x1xf32> to vector<8x8xf32>
    %88 = arith.mulf %85, %87 : vector<8x8xf32>
    %89 = arith.truncf %88 : vector<8x8xf32> to vector<8x8xbf16>
    %c0_54 = arith.constant 0 : index
    %c24_55 = arith.constant 24 : index
    %90 = vector.load %arg11[%c0_54, %c24_55] : memref<8x32xbf16, #tpu.memory_space<vmem>>, vector<8x8xbf16>
    tpu.vector_store %arg11[%c0_54, %c24_55], %89 {strides = array<i32>} : memref<8x32xbf16, #tpu.memory_space<vmem>>, vector<8x8xbf16>,
    %c0_56 = arith.constant 0 : index
    %c0_57 = arith.constant 0 : index
    %91 = vector.load %arg11[%c0_56, %c0_57] : memref<8x32xbf16, #tpu.memory_space<vmem>>, vector<8x32xbf16>
    %c0_58 = arith.constant 0 : index
    %c0_59 = arith.constant 0 : index
    %92 = vector.load %arg6[%c0_58, %c0_59] : memref<32x32xbf16, #tpu.memory_space<vmem>>, vector<32x32xbf16>
    %cst_60 = arith.constant dense<0.000000e+00> : vector<8x32xf32>
    %93 = tpu.matmul %91, %92, %cst_60 {dimension_numbers = #tpu.dot_dimension_numbers<[1], [0], [0], [1], [0, 0, 1, 1], [], []>} : vector<8x32xbf16>, vector<32x32xbf16>, vector<8x32xf32> -> vector<8x32xf32>
    %c0_61 = arith.constant 0 : index
    %c0_62 = arith.constant 0 : index
    %94 = vector.load %arg7[%c0_61, %c0_62] : memref<1x32xf32, #tpu.memory_space<vmem>>, vector<1x32xf32>
    %95 = vector.broadcast %94 : vector<1x32xf32> to vector<8x32xf32>
    %96 = arith.addf %93, %95 : vector<8x32xf32>
    %c0_63 = arith.constant 0 : index
    %c0_64 = arith.constant 0 : index
    %c0_65 = arith.constant 0 : index
    %97 = vector.load %arg8[%c0_63, %c0_64, %c0_65] : memref<1x8x32xf32, #tpu.memory_space<vmem>>, vector<1x8x32xf32>
    %98 = vector.shape_cast %97 : vector<1x8x32xf32> to vector<8x32xf32>
    %99 = vector.shape_cast %96 : vector<8x32xf32> to vector<1x8x32xf32>
    tpu.vector_store %arg8[%c0_63, %c0_64, %c0_65], %99 {strides = array<i32>} : memref<1x8x32xf32, #tpu.memory_space<vmem>>, vector<1x8x32xf32>,
    return
  }
  func.func @transform_0(%arg0: i32, %arg1: i32) -> (i32, i32, i32) {
    %c0_i32 = arith.constant 0 : i32
    %c0_i32_0 = arith.constant 0 : i32
    return %arg0, %arg1, %c0_i32 : i32, i32, i32
  }
  func.func @transform_1(%arg0: i32, %arg1: i32) -> (i32, i32, i32) {
    %c0_i32 = arith.constant 0 : i32
    %c0_i32_0 = arith.constant 0 : i32
    %c0_i32_1 = arith.constant 0 : i32
    return %arg0, %c0_i32, %c0_i32_0 : i32, i32, i32
  }
  func.func @transform_2(%arg0: i32, %arg1: i32) -> (i32, i32, i32) {
    %c0_i32 = arith.constant 0 : i32
    %c0_i32_0 = arith.constant 0 : i32
    %c0_i32_1 = arith.constant 0 : i32
    return %arg0, %c0_i32, %c0_i32_0 : i32, i32, i32
  }
  func.func @transform_3(%arg0: i32, %arg1: i32) -> (i32, i32) {
    %c0_i32 = arith.constant 0 : i32
    %c0_i32_0 = arith.constant 0 : i32
    %c0_i32_1 = arith.constant 0 : i32
    return %c0_i32, %c0_i32_0 : i32, i32
  }
  func.func @transform_4(%arg0: i32, %arg1: i32) -> (i32, i32) {
    %c0_i32 = arith.constant 0 : i32
    %c0_i32_0 = arith.constant 0 : i32
    %c0_i32_1 = arith.constant 0 : i32
    return %c0_i32, %c0_i32_0 : i32, i32
  }
  func.func @transform_5(%arg0: i32, %arg1: i32) -> (i32, i32) {
    %c0_i32 = arith.constant 0 : i32
    %c0_i32_0 = arith.constant 0 : i32
    %c0_i32_1 = arith.constant 0 : i32
    return %c0_i32, %c0_i32_0 : i32, i32
  }
  func.func @transform_6(%arg0: i32, %arg1: i32) -> (i32, i32, i32) {
    %c0_i32 = arith.constant 0 : i32
    %c0_i32_0 = arith.constant 0 : i32
    return %arg0, %arg1, %c0_i32 : i32, i32, i32
  }
}

</mosaic_0001>

<bundles_post_ra>
// kernel: tpu_custom_call.1
= control target key start
LH: loop header
LB: loop body
LE: loop exit
PB: predicated region body
PF: predicated region fallthrough
CT: control target
= control target key end

     0   :  { %s2297_s0 = inlined_call_operand.hbm [shape: bf16[2,8,32], index: 0, kind: input, shape index: {}]   ;;  %s2298_s1 = inlined_call_operand.hbm [shape: bf16[2,8,32], index: 1, kind: input, shape index: {}]   ;;  %s2299_s2 = inlined_call_operand.hbm [shape: bf16[2,8,32], index: 2, kind: input, shape index: {}]   ;;  %s2300_s3 = inlined_call_operand.hbm [shape: bf16[32,96], index: 3, kind: input, shape index: {}]   ;;  %s2301_s4 = inlined_call_operand.hbm [shape: bf16[32,32], index: 4, kind: input, shape index: {}]   ;;  %s2302_s5 = inlined_call_operand.vmem [shape: f32[1,32], index: 5, kind: input, shape index: {}]   ;;  %s2303_s6 = inlined_call_operand.hbm [shape: f32[2,8,32], index: 6, kind: output, shape index: {}]  }
   0x1   :  { %2322 = sst [smem:[#allocation23_spill]] %s2298_s1 }
   0x2   :  { %2323 = sst [smem:[#allocation24_spill]] %s2300_s3 }
   0x3   :  { %2324 = sst [smem:[#allocation25_spill]] %s2301_s4 }
   0x4   :  { %11 = vsyncpa [#allocation6], 0 }
   0x5   :  { %13 = vsyncpa [#allocation6 + $0x1], 0 }
   0x6   :  { %14 = vsyncpa [#allocation9], 0 }
   0x7   :  { %16 = vsyncpa [#allocation9 + $0x1], 0 }
   0x8   :  { %17 = vsyncpa [#allocation12], 0 }
   0x9   :  { %18 = vsyncpa [#allocation7], 0 }
   0xa   :  { %20 = vsyncpa [#allocation7 + $0x1], 0  ;;  %s1889_s21 = smov 0   ;;  %s1891_s22 = smov 0  }
   0xb   :  { %s1893_s23 = smov 0   ;;  %s1895_s24 = smov 0  }
   0xc   :  { %s1897_s25 = smov 0   ;;  %s1899_s26 = smov 0  }
   0xd LB: > { %2325 = sst [smem:[#allocation19_spill]] %s1830_s25  ;;  %s1920_s27 = sadd.s32 4294967295, %s1834_s26   ;;  %s1834_s26 = sphi %s1899_s26, %s26_s26   ;;  %s1830_s25 = sphi %s1897_s25, %s2359_s25   ;;  %s1826_s24 = sphi %s1895_s24, %s2358_s24   ;;  %s1822_s23 = sphi %s1893_s23, %s2362_s23   ;;  %s1818_s22 = sphi %s1891_s22, %s2361_s22   ;;  %s1814_s21 = sphi %s1889_s21, %s2360_s21  }
   0xe   : > { %2326 = sst [smem:[#allocation20_spill]] %s1834_s26  ;;  %s1300_s28 = sadd.s32 4294967294, %s1834_s26  }
   0xf   : > { %p60_p0 = scmp.ne.s32.totalorder %s1818_s22, %s1814_s21  ;;  %p2304_p1 = scmp.eq.s32.totalorder %s1920_s27, 0 }
  0x10   : > { %p207_p3 = scmp.eq.s32.totalorder %s1300_s28, 1  ;;  %p1301_p5 = scmp.ge.s32.totalorder %s1834_s26, 1 }
  0x11   : > { %p1929_p4 = por %p2304_p1, %p60_p0  ;;  %p214_p7 = scmp.lt.s32.totalorder %s1834_s26, 3 }
  0x12   : > { %p1934_p6 = por %p207_p3, %p60_p0  ;;  %s1836_s8 = smov [#allocation11]  }
  0x13   : > { %s2327_s29 = scalar_select %p1929_p4, 1, 0 }
  0x14   : > { %s2328_s30 = scalar_select %p1934_p6, 1, 0 }
  0x15   : > { %p1939_p8 = pnand %p1301_p5, %p214_p7  ;;  %s226_s9 = sshll.u32 %s1836_s8, 4  ;;  %s227_s9 = int_to_ptr.vmem [resolvable:$true] %s226_s9 }
  0x16   : > { %s38_s11 = sadd.s32 1, %s1830_s25  ;;  %s2331_s3 = sld [smem:[#allocation24_spill]] }
  0x17   : > { %s2329_s7 = scalar_select %p1939_p8, 1, 0 }
  0x18   : > { %p1479_p9 = pneg %p1939_p8 }
  0x1a   : > { %p1948_p11 = pnand %p1479_p9, %p2304_p1 }
  0x1c   : > { %s2330_s10 = scalar_select %p1948_p11, 1, 0 }
  0x1d   : > { %s1598_s14 = scalar_lea.hbm %s2331_s3, 256  ;;  %p2314_p13 = pneg %p1948_p11 }
  0x1e   : > { %p1599_p12 = scmp.ne.s32.totalorder %s2331_s3, %s1598_s14  ;;  %p1605_p5 = scmp.lt.u32.totalorder %s1598_s14, %s2331_s3 }
  0x20   : > { %p1601_p0 = pnand %p2314_p13, %p1599_p12 }
  0x22   : > { %p1602_p3 = pneg %p1601_p0 }
  0x24   : > { %p1607_p7 = pnand %p1605_p5, %p1602_p3 }
  0x26   : > { %1610 = shalt.err (!%p1607_p7)
}
  0x27   : > { %s1611_s19 = scalar_lea.vmem %s227_s9, 256  ;;  %p1619_p2 = scmp.lt.s32.totalorder %s227_s9, %s227_s9 }
  0x28   : > { %p1612_p9 = scmp.ne.s32.totalorder %s227_s9, %s1611_s19  ;;  %p1620_p6 = scmp.lt.s32.totalorder %s1611_s19, %s1611_s19 }
  0x2a   : > { %p1614_p10 = pnand %p1612_p9, %p2314_p13  ;;  %p1621_p4 = por %p1620_p6, %p1619_p2 }
  0x2c   : > { %p1615_p1 = pneg %p1614_p10 }
  0x2e   : > { %p1622_p8 = pnand %p1621_p4, %p1615_p1 }
  0x30   : > { %1625 = shalt.err (!%p1622_p8)
}
  0x31   : > { %s2307_s20 = smov 64   ;;  %s2309_s28 = smov 4  }
  0x32   : > { %1482 = dma.hbm_to_vmem [thread:$0]  (!%p1948_p11), %s2331_s3, 256, %s227_s9, [#allocation12], %s2307_s20, %s2307_s20, %s2309_s28  }
  0x33   : > { %p40_p1 = scmp.ge.s32.totalorder %s38_s11, 2  ;;  %s47_s13 = sadd.s32 1, %s1822_s23 }
  0x34   : > { %p54_p2 = scmp.ne.s32.totalorder %s1822_s23, %s1818_s22  ;;  %p55_p4 = scmp.eq.s32.totalorder %s1834_s26, 0 }
  0x35   : > { %s2364_s11 = smov (%p40_p1, %s38_s11), 0  ;;  %p2333_p8 = scmp.eq.s32.totalorder %s1920_s27, 1 }
  0x36   : > { %2332 = sst [smem:[#allocation21_spill]] %s2364_s11  ;;  %p56_p6 = por %p55_p4, %p54_p2 }
  0x37   : > { %p1986_p10 = por %p2333_p8, %p54_p2  ;;  %s42_s15 = ssub.s32 %s1830_s25, %s2364_s11 }
  0x38   : > { %p1502_p12 = scmp.lt.s32.totalorder %s1834_s26, 2  ;;  %p45_p0 = scmp.eq.s32.totalorder %s42_s15, 0 }
  0x39   : > { %s2334_s14 = scalar_select %p1986_p10, 1, 0 }
  0x3a   : > { %s2308_s16 = sand.u32 1, %s1822_s23   ;;  %s1999_s17 = sshll.u32 %s1830_s25, 6 }
  0x3b   : > { %s1996_s9 = sshll.u32 %s2308_s16, 2  ;;  %p2004_p3 = pnand %p1502_p12, %p56_p6 }
  0x3c   : > { %s2002_s18 = scalar_select %p45_p0, %s1822_s23, %s47_s13  }
  0x3d   : > { %s2336_s19 = scalar_select %p2004_p3, 1, 0 }
  0x3e   : > { %2335 = sst [smem:[#allocation22_spill]] %s2002_s18  ;;  %s275_s8 = sand.u32 1, %s1834_s26  }
  0x3f   : > { %s2337_s1 = sld [smem:[#allocation23_spill]]  ;;  %s279_s16 = scalar_lea.vmem [#allocation8], %s1996_s9 }
  0x40   : > { %s286_s28 = sshll.u32 %s279_s16, 4  ;;  %s1839_s13 = smov [#allocation13]   ;;  %s2016_s28 = int_to_ptr.vmem [resolvable:$true] %s286_s28 }
  0x41   : > { %s2018_s3 = sshll.u32 %s1839_s13, 4  ;;  %s2020_s11 = scalar_lea.sflag [#allocation9], %s275_s8  ;;  %s240_s3 = int_to_ptr.vmem [resolvable:$true] %s2018_s3 }
  0x42   : > { %p2026_p7 = pneg %p2004_p3 }
  0x44   : > { %s2338_s20 = scalar_select %p2026_p7, 1, 0 }
  0x45   : > { %s2013_s15 = scalar_lea.hbm %s2337_s1, %s1999_s17  ;;  %s1631_s18 = scalar_lea.hbm %s2337_s1, 128 }
  0x46   : > { %s1626_s25 = scalar_lea.hbm %s2013_s15, 64  ;;  %p1632_p2 = scmp.lt.u32.totalorder %s2013_s15, %s2337_s1 }
  0x47   : > { %p1627_p5 = scmp.ne.s32.totalorder %s2013_s15, %s1626_s25  ;;  %p1633_p4 = scmp.lt.u32.totalorder %s1631_s18, %s1626_s25 }
  0x48   : > { %p1635_p8 = scmp.lt.u32.totalorder %s1626_s25, %s2013_s15 }
  0x49   : > { %p1629_p9 = pnand %p2026_p7, %p1627_p5  ;;  %p1634_p6 = por %p1633_p4, %p1632_p2 }
  0x4b   : > { %p1630_p1 = pneg %p1629_p9  ;;  %p1636_p12 = por %p1635_p8, %p1634_p6 }
  0x4d   : > { %p1637_p0 = pnand %p1636_p12, %p1630_p1 }
  0x4f   : > { %1640 = shalt.err (!%p1637_p0)
}
  0x50   : > { %s1641_s8 = scalar_lea.vmem %s2016_s28, 64  ;;  %s1840_s12 = smov [#allocation8]  }
  0x51   : > { %p1642_p5 = scmp.ne.s32.totalorder %s2016_s28, %s1641_s8  ;;  %s1646_s16 = sshll.u32 %s1840_s12, 4  ;;  %s1647_s16 = int_to_ptr.vmem [resolvable:$false] %s1646_s16 }
  0x52   : > { %s1648_s26 = scalar_lea.vmem %s1647_s16, 128  ;;  %p1649_p10 = scmp.lt.s32.totalorder %s2016_s28, %s1647_s16 }
  0x53   : > { %p1644_p9 = pnand %p1642_p5, %p2026_p7  ;;  %p1650_p11 = scmp.lt.s32.totalorder %s1648_s26, %s1641_s8 }
  0x55   : > { %p1645_p13 = pneg %p1644_p9  ;;  %p1651_p2 = por %p1650_p11, %p1649_p10 }
  0x57   : > { %p1652_p4 = pnand %p1651_p2, %p1645_p13 }
  0x59   : > { %1655 = shalt.err (!%p1652_p4)
}
  0x5a   : > { %1492 = dma.hbm_to_vmem [thread:$0]  (!%p2004_p3), %s2013_s15, 64, %s2016_s28, %s2020_s11  }
  0x5b   : > { %s2339_s4 = sld [smem:[#allocation25_spill]]  ;;  %p2340_p11 = scmp.ne.s32.totalorder %s2330_s10, 0 }
  0x5d   : > { %p2341_p13 = pneg %p2340_p11 }
  0x61   : > { %s1656_s13 = scalar_lea.hbm %s2339_s4, 256 }
  0x62   : > { %p1657_p1 = scmp.ne.s32.totalorder %s2339_s4, %s1656_s13  ;;  %p1663_p8 = scmp.lt.u32.totalorder %s1656_s13, %s2339_s4 }
  0x64   : > { %p1659_p10 = pnand %p1657_p1, %p2341_p13 }
  0x66   : > { %p1660_p6 = pneg %p1659_p10 }
  0x68   : > { %p1665_p12 = pnand %p1663_p8, %p1660_p6 }
  0x6a   : > { %1668 = shalt.err (!%p1665_p12)
}
  0x6b   : > { %s1669_s28 = scalar_lea.vmem %s240_s3, 256  ;;  %p2342_p5 = pmov %p2341_p13 }
  0x6c   : > { %p1670_p0 = scmp.ne.s32.totalorder %s240_s3, %s1669_s28  ;;  %p1677_p4 = scmp.lt.s32.totalorder %s240_s3, %s240_s3 }
  0x6d   : > { %p1678_p3 = scmp.lt.s32.totalorder %s1669_s28, %s1669_s28 }
  0x6e   : > { %p1672_p9 = pnand %p1670_p0, %p2342_p5 }
  0x6f   : > { %p1679_p7 = por %p1678_p3, %p1677_p4 }
  0x70   : > { %p1673_p2 = pneg %p1672_p9 }
  0x72   : > { %p1680_p1 = pnand %p1679_p7, %p1673_p2 }
  0x74   : > { %1683 = shalt.err (!%p1680_p1)
}
  0x75   : > { %s2343_s1 = smov 4   ;;  %s2344_s15 = smov 64  }
  0x76   : > { %1485 = dma.hbm_to_vmem [thread:$0]  (!%p2340_p11), %s2339_s4, 256, %s240_s3, [#allocation12], %s2344_s15, %s2344_s15, %s2343_s1  }
  0x77   : > { %s2078_s12 = scalar_lea.hbm %s2297_s0, %s1999_s17  ;;  %s260_s10 = scalar_lea.vmem [#allocation5], %s1996_s9 }
  0x78   : > { %s268_s8 = sshll.u32 %s260_s10, 4  ;;  %s2087_s26 = scalar_lea.hbm %s2299_s2, %s1999_s17  ;;  %s2081_s8 = int_to_ptr.vmem [resolvable:$true] %s268_s8 }
  0x79   : > { %s2345_s25 = sand.u32 1, %s1822_s23   ;;  %s1684_s1 = scalar_lea.hbm %s2078_s12, 64 }
  0x7a   : > { %s257_s3 = scalar_lea.sflag [#allocation6], %s2345_s25  ;;  %p1685_p3 = scmp.ne.s32.totalorder %s2078_s12, %s1684_s1 }
  0x7b   : > { %p2346_p7 = scmp.ne.s32.totalorder %s2338_s20, 0  ;;  %s1689_s13 = scalar_lea.hbm %s2297_s0, 128 }
  0x7c   : > { %p1690_p10 = scmp.lt.u32.totalorder %s2078_s12, %s2297_s0  ;;  %p1691_p6 = scmp.lt.u32.totalorder %s1689_s13, %s1684_s1 }
  0x7d   : > { %p1687_p11 = pnand %p1685_p3, %p2346_p7  ;;  %p1693_p12 = scmp.lt.u32.totalorder %s1684_s1, %s2078_s12 }
  0x7e   : > { %p1692_p8 = por %p1691_p6, %p1690_p10 }
  0x7f   : > { %p1688_p13 = pneg %p1687_p11 }
  0x80   : > { %p1694_p0 = por %p1693_p12, %p1692_p8 }
  0x82   : > { %p1695_p5 = pnand %p1694_p0, %p1688_p13 }
  0x84   : > { %1698 = shalt.err (!%p1695_p5)
}
  0x85   : > { %s1699_s17 = scalar_lea.vmem %s2081_s8, 64  ;;  %s1841_s16 = smov [#allocation5]  }
  0x86   : > { %p1700_p9 = scmp.ne.s32.totalorder %s2081_s8, %s1699_s17  ;;  %s1704_s28 = sshll.u32 %s1841_s16, 4  ;;  %s1705_s28 = int_to_ptr.vmem [resolvable:$false] %s1704_s28 }
  0x87   : > { %s1706_s4 = scalar_lea.vmem %s1705_s28, 128  ;;  %p1707_p1 = scmp.lt.s32.totalorder %s2081_s8, %s1705_s28 }
  0x88   : > { %p1702_p2 = pnand %p1700_p9, %p2346_p7  ;;  %p1708_p3 = scmp.lt.s32.totalorder %s1706_s4, %s1699_s17 }
  0x8a   : > { %p1703_p4 = pneg %p1702_p2  ;;  %p1709_p11 = por %p1708_p3, %p1707_p1 }
  0x8c   : > { %p1710_p10 = pnand %p1709_p11, %p1703_p4 }
  0x8e   : > { %1713 = shalt.err (!%p1710_p10)
}
  0x8f   : > { %p2347_p13 = scmp.ne.s32.totalorder %s2336_s19, 0  ;;  %s297_s25 = scalar_lea.vmem [#allocation10], %s1996_s9 }
  0x90   : > { %s304_s1 = sshll.u32 %s297_s25, 4  ;;  %s1714_s15 = scalar_lea.hbm %s2087_s26, 64  ;;  %s305_s1 = int_to_ptr.vmem [resolvable:$true] %s304_s1 }
  0x91   : > { %1489 = dma.hbm_to_vmem [thread:$0]  (!%p2347_p13), %s2078_s12, 64, %s2081_s8, %s257_s3  }
  0x92   : > { %p1715_p6 = scmp.ne.s32.totalorder %s2087_s26, %s1714_s15  ;;  %s1719_s10 = scalar_lea.hbm %s2299_s2, 128 }
  0x93   : > { %p1720_p0 = scmp.lt.u32.totalorder %s2087_s26, %s2299_s2  ;;  %p1721_p5 = scmp.lt.u32.totalorder %s1719_s10, %s1714_s15 }
  0x94   : > { %p1717_p8 = pnand %p1715_p6, %p2346_p7  ;;  %p1723_p2 = scmp.lt.u32.totalorder %s1714_s15, %s2087_s26 }
  0x95   : > { %p1722_p9 = por %p1721_p5, %p1720_p0 }
  0x96   : > { %p1718_p12 = pneg %p1717_p8 }
  0x97   : > { %p1724_p4 = por %p1723_p2, %p1722_p9 }
  0x99   : > { %p1725_p1 = pnand %p1724_p4, %p1718_p12 }
  0x9b   : > { %1728 = shalt.err (!%p1725_p1)
}
  0x9c   : > { %s1729_s9 = scalar_lea.vmem %s305_s1, 64  ;;  %s1842_s12 = smov [#allocation10]  }
  0x9d   : > { %p1730_p3 = scmp.ne.s32.totalorder %s305_s1, %s1729_s9  ;;  %s1734_s8 = sshll.u32 %s1842_s12, 4  ;;  %s1735_s8 = int_to_ptr.vmem [resolvable:$false] %s1734_s8 }
  0x9e   : > { %s1736_s3 = scalar_lea.vmem %s1735_s8, 128  ;;  %p1737_p6 = scmp.lt.s32.totalorder %s305_s1, %s1735_s8 }
  0x9f   : > { %p1732_p11 = pnand %p1730_p3, %p2346_p7  ;;  %p1738_p8 = scmp.lt.s32.totalorder %s1736_s3, %s1729_s9 }
  0xa1   : > { %p1733_p10 = pneg %p1732_p11  ;;  %p1739_p13 = por %p1738_p8, %p1737_p6 }
  0xa3   : > { %p1740_p0 = pnand %p1739_p13, %p1733_p10 }
  0xa5   : > { %1743 = shalt.err (!%p1740_p0)
}
  0xa6   : > { %p2348_p5 = scmp.ne.s32.totalorder %s2336_s19, 0  ;;  %p2349_p12 = scmp.ne.s32.totalorder %s2329_s7, 0 }
  0xa7   : > { %s2134_s20 = sand.u32 (!%p2349_p12), 1, %s1818_s22   ;;  %p2350_p7 = scmp.ne.s32.totalorder (!%p2349_p12), %s2327_s29, 0 }
  0xa8   : > { %1495 = dma.hbm_to_vmem [thread:$0]  (!%p2348_p5), %s2087_s26, 64, %s305_s1, %s2020_s11  }
  0xa9   : > { %313 = sbr.rel (%p2349_p12) target bundleno = 1609 (0x649), region = 44  ;;  %s2137_s28 = sshll.u32 (!%p2349_p12), %s2134_s20, 2 }
  0xaa   : > { %s316_s4 = scalar_lea.sflag (!%p2349_p12), [#allocation6], %s2134_s20  ;;  %s319_s25 = scalar_lea.vmem (!%p2349_p12), [#allocation5], %s2137_s28 }
  0xb0   : > { %1797 = dma.done.wait (%p2350_p7), %s316_s4, 64  }
  0xb1   : > { %1799 = vsyncadd (%p2350_p7), %s316_s4, 4294967232  ;;  %s324_s7 = sand.u32 1, %s1920_s27   ;;  %s328_s19 = scalar_lea.vmem [#allocation8], %s2137_s28 }
  0xb2   : > { %s325_s11 = scalar_lea.sflag [#allocation9], %s324_s7 }
  0xb3   : > { %1801 = dma.done.wait (%p2350_p7), %s325_s11, 128  }
  0xb4   : > { %1803 = vsyncadd (%p2350_p7), %s325_s11, 4294967168  ;;  %s337_s26 = scalar_lea.vmem [#allocation10], %s2137_s28  ;;  %p2351_p13 = scmp.eq.s32.totalorder %s1920_s27, 0 }
  0xb6   : > { %1805 = dma.done.wait (%p2351_p13), [#allocation12], 512   ;;  %p2352_p9 = pmov %p2351_p13 }
  0xb7   : > { %v1843_v0 = vmov 0.0   ;;  %vm1844_vm0 = vmmov 0   ;;  %v1568_v1 = vld [vmem:[#allocation11] sm:$0xff]   ;;  %s1845_s29 = smov 96   ;;  %v1569_v2 = vld [vmem:[#allocation11 + $0x8] sm:$0xff]   ;;  %s1846_s27 = smov 64  }
  0xb8   : > { %1807 = vsyncadd (%p2352_p9), [#allocation12], 4294966784  ;;  %1383 = vmatprep.subr.bf16.mxu0 %v1843_v0  ;;  %1387 = vmatprep.mubr.msk.bf16.mxu0 %vm1844_vm0, %v1843_v0  ;;  %v1572_v3 = vld [vmem:[#allocation11] sm:$0xff]   ;;  %v1573_v4 = vld [vmem:[#allocation11 + $0x8] sm:$0xff]   ;;  %vm407_vm1 = vcmask 261120   ;;  %vm452_vm2 = vcmask 257024  }
  0xb9   : > { %1391 = vmatprep.subr.bf16.mxu1 %v1843_v0  ;;  %1395 = vmatprep.mubr.msk.bf16.mxu1 %vm1844_vm0, %v1843_v0  ;;  %v385_v7 = vld [vmem:[%s328_s19] sm:$0xf]  ;;  %v1570_v8 = vld [vmem:[#allocation11] sm:$0xff]   ;;  %v1571_v10 = vld [vmem:[#allocation11 + $0x8] sm:$0xff]   ;;  %vm583_vm3 = vcmask 64512   ;;  %s1847_s1 = smov 120  }
  0xba   : > { %401 = vrot.lane.b32.xlu0 %v1568_v1, %s1845_s29  ;;  %468 = vrot.lane.b32.xlu1 %v1572_v3, %s1846_s27  ;;  %v519_v11 = vld [vmem:[%s319_s25] sm:$0xf]  ;;  %v386_v13 = vld [vmem:[%s337_s26] sm:$0xf]  ;;  %s1848_s15 = smov 112   ;;  %s1849_s18 = smov 104  }
  0xbb   : > { %vm643_vm4 = vcmask 1043456   ;;  %vm690_vm5 = vcmask 60416   ;;  %s1850_s13 = smov 8   ;;  %s1851_s10 = smov 16   ;;  %vm818_vm6 = vcmask 126016   ;;  %vm945_vm7 = vcmask 191616  }
  0xbc   : > { %s1852_s17 = smov 24   ;;  %vm1072_vm8 = vcmask 257216   ;;  %s1317_s16 = sshll.u32 %s2134_s20, 3 }
  0xbd   : > { %s1349_s8 = sshll.u32 %s1826_s24, 7  ;;  %s383_s3 = scalar_lea.vmem [#allocation14], %s1317_s16 }
  0xbe   : > { %403 = vrot.lane.b32.xlu0 %v1569_v2, %s1845_s29  ;;  %470 = vrot.lane.b32.xlu1 %v1573_v4, %s1846_s27  ;;  %s1157_s28 = sshll.u32 %s383_s3, 4  ;;  %s2247_s7 = scalar_lea.hbm %s2303_s6, %s1349_s8  ;;  %s2249_s28 = int_to_ptr.vmem [resolvable:$true] %s1157_s28 }
  0xbf   : > { %s1143_s24 = scalar_lea.sflag [#allocation7], %s2134_s20  ;;  %s1744_s11 = scalar_lea.vmem %s2249_s28, 128 }
  0xc0   : > { %p1745_p2 = scmp.ne.s32.totalorder %s2249_s28, %s1744_s11  ;;  %p2353_p4 = scmp.ne.s32.totalorder %s2334_s14, 0 }
  0xc1   : > { %s1853_s19 = smov [#allocation14]  }
  0xc2   : > { %p1746_p1 = pnand %p1745_p2, %p2353_p4  ;;  %s1748_s26 = sshll.u32 %s1853_s19, 4  ;;  %s1749_s26 = int_to_ptr.vmem [resolvable:$false] %s1748_s26 }
  0xc3   : > { %s1750_s29 = scalar_lea.vmem %s1749_s26, 256  ;;  %p1751_p11 = scmp.lt.s32.totalorder %s2249_s28, %s1749_s26 }
  0xc4   : > { %p1747_p3 = pneg %p1746_p1  ;;  %p1752_p10 = scmp.lt.s32.totalorder %s1750_s29, %s1744_s11 }
  0xc6   : > { %p1753_p6 = por %p1752_p10, %p1751_p11 }
  0xc8   : > { %p1754_p8 = pnand %p1753_p6, %p1747_p3 }
 0x12c   : > { %v402_v5 = vpop.permute.xlu0 %401  ;;  %v469_v9 = vpop.permute.xlu1 %468 }
 0x12d   : > { %1384 = vmatpush3.bf16.msra.mxu0 %v402_v5  ;;  %1392 = vmatpush3.bf16.msra.mxu1 %v469_v9 }
 0x12e   : > { %1385 = vmatprep.subr.bf16.mxu0 %v1843_v0  ;;  %1393 = vmatprep.subr.bf16.mxu1 %v1843_v0 }
 0x130   : > { %v404_v6 = vpop.permute.xlu0 %403  ;;  %v471_v12 = vpop.permute.xlu1 %470 }
 0x131   : > { %1386 = vmatpush3.bf16.msra.mxu0 %v404_v6  ;;  %1394 = vmatpush3.bf16.msra.mxu1 %v471_v12 }
 0x132   : > { %1399 = vmatprep.subr.bf16.mxu0 %v1843_v0  ;;  %1407 = vmatprep.subr.bf16.mxu1 %v1843_v0 }
 0x134   : > { %1388 = vmatmul.mubr.msk.bf16.vlgmr.msra.gmra.mrb[0].mxu0 %vm407_vm1, %v385_v7  ;;  %1396 = vmatmul.mubr.msk.bf16.vlgmr.msra.gmra.mrb[0].mxu1 %vm407_vm1, %v386_v13 }
 0x135   : > { %1400 = vmatpush3.bf16.msra.mxu0 %v1570_v8  ;;  %1403 = vmatprep.mubr.msk.bf16.mxu0 %vm1844_vm0, %v1843_v0 }
 0x136   : > { %1401 = vmatprep.subr.bf16.mxu0 %v1843_v0  ;;  %1409 = vmatprep.mubr.msk.bf16.mxu1 %vm1844_vm0, %v1843_v0 }
 0x139   : > { %1402 = vmatpush3.bf16.msra.mxu0 %v1571_v10 }
 0x13a   : > { %1413 = vmatprep.subr.bf16.mxu0 %v1843_v0 }
 0x13c   : > { %1404 = vmatmul.mubr.msk.bf16.vlgmr.msra.gmra.mrb[4].mxu0 %vm407_vm1, %v519_v11 }
 0x13d   : > { %1415 = vmatprep.mubr.msk.bf16.mxu0 %vm1844_vm0, %v1843_v0 }
 0x207   : > { %v445_v14 = vpop.f32.mrb[0].mxu0  ;;  %v511_v30 = vpop.f32.mrb[0].mxu1 }
 0x208   : > { %v451_v15 = vpack.c.bf16 %v445_v14, %v445_v14  ;;  %v1389_v16 = vpop.f32.mrb[1].mxu0  ;;  %v517_v31 = vpack.c.bf16 %v511_v30, %v511_v30  ;;  %v1397_v32 = vpop.f32.mrb[1].mxu1 }
 0x209   : > { %v448_v17 = vpop.f32.mrb[2].mxu0  ;;  %v514_v33 = vpop.f32.mrb[2].mxu1 }
 0x20a   : > { %453 = vst.msk [vmem:[#allocation2] sm:$0xf] %vm452_vm2, %v451_v15  ;;  %v1390_v18 = vpop.f32.mrb[3].mxu0  ;;  %518 = vst.msk [vmem:[#allocation3] sm:$0xf] %vm452_vm2, %v517_v31  ;;  %v1398_v34 = vpop.f32.mrb[3].mxu1 }
 0x20f   : > { %v573_v19 = vpop.f32.mrb[4].mxu0 }
 0x210   : > { %v579_v20 = vmul.f32 0.17677669, %v573_v19  ;;  %v1405_v21 = vpop.f32.mrb[5].mxu0 }
 0x211   : > { %v581_v22 = vld [vmem:[#allocation2] sm:$0xf]  ;;  %v576_v26 = vpop.f32.mrb[6].mxu0  ;;  %v582_v35 = vld [vmem:[#allocation3] sm:$0xf] }
 0x212   : > { %v1574_v23 = vld [vmem:[#allocation2] ss:$0 sps:$4 sm:$0xff]   ;;  %v580_v24 = vpack.c.bf16 %v579_v20, %v579_v20  ;;  %v588_v25 = vsel %vm583_vm3, %v581_v22, 0  ;;  %v1406_v27 = vpop.f32.mrb[7].mxu0  ;;  %v645_v36 = vsel %vm643_vm4, %v582_v35, 0 }
 0x213   : > { %1408 = vmatpush3.bf16.xpose.msra.mxu1 %v588_v25  ;;  %700 = vrot.lane.b32.xlu0 %v1574_v23, %s1847_s1  ;;  %v1575_v28 = vld [vmem:[#allocation2] ss:$0 sps:$4 sm:$0xff]   ;;  %v1577_v1 = vld [vmem:[#allocation3] ss:$0 sps:$4 sm:$0xff]  }
 0x214   : > { %695 = vrot.lane.b32.xlu1 %v580_v24, %s1847_s1  ;;  %1419 = vmatprep.subr.bf16.mxu1 %v1843_v0  ;;  %v1576_v29 = vld [vmem:[#allocation2] ss:$0 sps:$4 sm:$0xff]   ;;  %v1578_v4 = vld [vmem:[#allocation3] ss:$0 sps:$4 sm:$0xff]  }
 0x215   : > { %1414 = vmatpush3.bf16.msra.mxu0 %v645_v36  ;;  %v1579_v8 = vld [vmem:[#allocation3] ss:$0 sps:$4 sm:$0xff]  }
 0x216   : > { %1425 = vmatprep.subr.bf16.mxu0 %v1843_v0 }
 0x217   : > { %827 = vrot.lane.b32.xlu0 %v1575_v28, %s1848_s15 }
 0x218   : > { %822 = vrot.lane.b32.xlu1 %v580_v24, %s1848_s15 }
 0x21a   : > { %1410 = vmatmul.mubr.msk.bf16.vlgmr.msra.gmra.mrb[4].mxu1 %vm583_vm3, %v580_v24 }
 0x21b   : > { %954 = vrot.lane.b32.xlu0 %v1576_v29, %s1849_s18  ;;  %1421 = vmatprep.mubr.msk.bf16.mxu1 %vm1844_vm0, %v1843_v0 }
 0x21c   : > { %949 = vrot.lane.b32.xlu1 %v580_v24, %s1849_s18 }
 0x285   : > { %v701_v37 = vpop.permute.xlu0 %700 }
 0x286   : > { %v706_v38 = vsel %vm583_vm3, %v701_v37, 0  ;;  %v696_v40 = vpop.permute.xlu1 %695 }
 0x287   : > { %1420 = vmatpush3.bf16.xpose.msra.mxu1 %v706_v38 }
 0x288   : > { %1431 = vmatprep.subr.bf16.mxu1 %v1843_v0 }
 0x289   : > { %v828_v39 = vpop.permute.xlu0 %827 }
 0x28a   : > { %v833_v41 = vsel %vm583_vm3, %v828_v39, 0  ;;  %v823_v43 = vpop.permute.xlu1 %822 }
 0x28d   : > { %v955_v42 = vpop.permute.xlu0 %954 }
 0x28e   : > { %1422 = vmatmul.mubr.msk.bf16.vlgmr.msra.gmra.mrb[8].mxu1 %vm583_vm3, %v696_v40  ;;  %v960_v44 = vsel %vm583_vm3, %v955_v42, 0  ;;  %v950_v45 = vpop.permute.xlu1 %949 }
 0x28f   : > { %1432 = vmatpush3.bf16.xpose.msra.mxu1 %v833_v41  ;;  %1433 = vmatprep.mubr.msk.bf16.mxu1 %vm1844_vm0, %v1843_v0 }
 0x290   : > { %1443 = vmatprep.subr.bf16.mxu1 %v1843_v0 }
 0x296   : > { %1434 = vmatmul.mubr.msk.bf16.vlgmr.msra.gmra.mrb[12].mxu1 %vm583_vm3, %v823_v43 }
 0x297   : > { %1444 = vmatpush3.bf16.xpose.msra.mxu1 %v960_v44  ;;  %1445 = vmatprep.mubr.msk.bf16.mxu1 %vm1844_vm0, %v1843_v0 }
 0x298   : > { %1455 = vmatprep.subr.bf16.mxu1 %v1843_v0 }
 0x29e   : > { %1446 = vmatmul.mubr.msk.bf16.vlgmr.msra.gmra.mrb[16].mxu1 %vm583_vm3, %v950_v45 }
 0x29f   : > { %1459 = vmatprep.mubr.msk.bf16.mxu1 %vm1844_vm0, %v1843_v0 }
 0x2ed   : > { %v624_v46 = vpop.f32.mrb[4].mxu1 }
 0x2ee   : > { %v1411_v47 = vpop.f32.mrb[5].mxu1  ;;  %v630_v48 = vsel %vm583_vm3, %v624_v46, -inf }
 0x2ef   : > { %631 = vmax.xlane.f32.xlu0 %v630_v48  ;;  %v627_v49 = vpop.f32.mrb[6].mxu1 }
 0x2f0   : > { %v1412_v50 = vpop.f32.mrb[7].mxu1 }
 0x361   : > { %v742_v51 = vpop.f32.mrb[8].mxu1 }
 0x362   : > { %v1423_v52 = vpop.f32.mrb[9].mxu1  ;;  %v748_v53 = vsel %vm583_vm3, %v742_v51, -inf }
 0x363   : > { %749 = vmax.xlane.f32.xlu1 %v748_v53  ;;  %v745_v54 = vpop.f32.mrb[10].mxu1 }
 0x364   : > { %v1424_v55 = vpop.f32.mrb[11].mxu1 }
 0x369   : > { %v869_v56 = vpop.f32.mrb[12].mxu1 }
 0x36a   : > { %v1435_v57 = vpop.f32.mrb[13].mxu1  ;;  %v875_v58 = vsel %vm583_vm3, %v869_v56, -inf }
 0x36b   : > { %876 = vmax.xlane.f32.xlu0 %v875_v58  ;;  %v872_v59 = vpop.f32.mrb[14].mxu1 }
 0x36c   : > { %v1436_v60 = vpop.f32.mrb[15].mxu1 }
 0x36d   : > { %v1581_v60 = vld [vmem:[#allocation13 + $0x8] sm:$0xff]  }
 0x371   : > { %v996_v61 = vpop.f32.mrb[16].mxu1 }
 0x372   : > { %v1447_v62 = vpop.f32.mrb[17].mxu1  ;;  %v1002_v63 = vsel %vm583_vm3, %v996_v61, -inf }
 0x373   : > { %1003 = vmax.xlane.f32.xlu0 %v1002_v63  ;;  %v999_v2 = vpop.f32.mrb[18].mxu1 }
 0x374   : > { %761 = vrot.lane.b32.xlu1 %v1577_v1, %s1847_s1  ;;  %v1448_v3 = vpop.f32.mrb[19].mxu1 }
 0x378   : > { %1015 = vrot.lane.b32.xlu1 %v1578_v4, %s1849_s18 }
 0x37c   : > { %v632_v5 = vpop.xlane.xlu0 %631 }
 0x37d   : > { %v633_v6 = vsub.f32 %v624_v46, %v632_v5 }
 0x37f   : > { %v634_v7 = vmul.f32 1.442695, %v633_v6 }
 0x381   : > { %1582 = vpow2.f32 %v634_v7 }
 0x389   : > { %888 = vrot.lane.b32.xlu0 %v1579_v8, %s1848_s15 }
 0x38b   : > { %v1583_v9 = vpop.eup %1582 }
 0x38c   : > { %v639_v10 = vpack.c.bf16 %v1583_v9, %v1583_v9  ;;  %v636_v26 = vsel %vm583_vm3, %v1583_v9, 0.0 }
 0x38e   : > { %1416 = vmatmul.mubr.msk.bf16.vlgmr.msra.gmra.mrb[8].mxu0 %vm583_vm3, %v639_v10  ;;  %v1344_v10 = vld [vmem:[%s2302_s5] ss:$0 sm:$0xff] }
 0x38f   : > { %1427 = vmatprep.mubr.msk.bf16.mxu0 %vm1844_vm0, %v1843_v0 }
 0x3f0   : > { %v750_v11 = vpop.xlane.xlu1 %749 }
 0x3f1   : > { %v751_v12 = vsub.f32 %v742_v51, %v750_v11 }
 0x3f3   : > { %v752_v13 = vmul.f32 1.442695, %v751_v12 }
 0x3f4   : > { %v762_v14 = vpop.permute.xlu1 %761 }
 0x3f5   : > { %1584 = vpow2.f32 %v752_v13  ;;  %v767_v15 = vsel %vm643_vm4, %v762_v14, 0 }
 0x3f6   : > { %1426 = vmatpush3.bf16.msra.mxu0 %v767_v15 }
 0x3f7   : > { %1437 = vmatprep.subr.bf16.mxu0 %v1843_v0 }
 0x3f8   : > { %v877_v16 = vpop.xlane.xlu0 %876  ;;  %v1016_v29 = vpop.permute.xlu1 %1015 }
 0x3f9   : > { %v878_v17 = vsub.f32 %v869_v56, %v877_v16  ;;  %v1021_v32 = vsel %vm643_vm4, %v1016_v29, 0  ;;  %v1580_v56 = vld [vmem:[#allocation13] sm:$0xff]  }
 0x3fa   : > { %1456 = vmatpush3.bf16.msra.mxu1 %v1580_v56 }
 0x3fb   : > { %v879_v18 = vmul.f32 1.442695, %v878_v17  ;;  %1457 = vmatprep.subr.bf16.mxu1 %v1843_v0 }
 0x3fd   : > { %1586 = vpow2.f32 %v879_v18 }
 0x3fe   : > { %1458 = vmatpush3.bf16.msra.mxu1 %v1581_v60 }
 0x3ff   : > { %v1585_v19 = vpop.eup %1584 }
 0x400   : > { %v1004_v20 = vpop.xlane.xlu0 %1003  ;;  %v754_v21 = vsel %vm583_vm3, %v1585_v19, 0.0  ;;  %v757_v22 = vpack.c.bf16 %v1585_v19, %v1585_v19 }
 0x401   : > { %v1005_v23 = vsub.f32 %v996_v61, %v1004_v20  ;;  %755 = vadd.xlane.f32.xlu1 %v754_v21 }
 0x402   : > { %1428 = vmatmul.mubr.msk.bf16.vlgmr.msra.gmra.mrb[12].mxu0 %vm583_vm3, %v757_v22 }
 0x403   : > { %v1006_v24 = vmul.f32 1.442695, %v1005_v23  ;;  %1439 = vmatprep.mubr.msk.bf16.mxu0 %vm1844_vm0, %v1843_v0 }
 0x404   : > { %v889_v25 = vpop.permute.xlu0 %888 }
 0x405   : > { %1588 = vpow2.f32 %v1006_v24  ;;  %v894_v27 = vsel %vm643_vm4, %v889_v25, 0  ;;  %637 = vadd.xlane.f32.xlu1 %v636_v26 }
 0x406   : > { %1438 = vmatpush3.bf16.msra.mxu0 %v894_v27 }
 0x407   : > { %v1587_v28 = vpop.eup %1586  ;;  %1449 = vmatprep.subr.bf16.mxu0 %v1843_v0 }
 0x408   : > { %v881_v30 = vsel %vm583_vm3, %v1587_v28, 0.0  ;;  %v884_v31 = vpack.c.bf16 %v1587_v28, %v1587_v28 }
 0x409   : > { %882 = vadd.xlane.f32.xlu0 %v881_v30 }
 0x40a   : > { %1440 = vmatmul.mubr.msk.bf16.vlgmr.msra.gmra.mrb[16].mxu0 %vm583_vm3, %v884_v31 }
 0x40b   : > { %1450 = vmatpush3.bf16.msra.mxu0 %v1021_v32  ;;  %1451 = vmatprep.mubr.msk.bf16.mxu0 %vm1844_vm0, %v1843_v0 }
 0x40f   : > { %v1589_v33 = vpop.eup %1588 }
 0x410   : > { %v1008_v34 = vsel %vm583_vm3, %v1589_v33, 0.0  ;;  %v1011_v35 = vpack.c.bf16 %v1589_v33, %v1589_v33 }
 0x411   : > { %1009 = vadd.xlane.f32.xlu0 %v1008_v34 }
 0x412   : > { %1452 = vmatmul.mubr.msk.bf16.vlgmr.msra.gmra.mrb[20].mxu0 %vm583_vm3, %v1011_v35 }
 0x461   : > { %v681_v36 = vpop.f32.mrb[8].mxu0 }
 0x462   : > { %v1417_v37 = vpop.f32.mrb[9].mxu0 }
 0x463   : > { %v684_v38 = vpop.f32.mrb[10].mxu0 }
 0x464   : > { %v1418_v39 = vpop.f32.mrb[11].mxu0 }
 0x48e   : > { %v756_v40 = vpop.xlane.xlu1 %755 }
 0x492   : > { %v638_v41 = vpop.xlane.xlu1 %637 }
 0x493   : > { %1590 = vrcp.f32 %v638_v41 }
 0x494   : > { %1592 = vrcp.f32 %v756_v40 }
 0x496   : > { %v883_v45 = vpop.xlane.xlu0 %882 }
 0x497   : > { %1594 = vrcp.f32 %v883_v45 }
 0x49d   : > { %v1591_v42 = vpop.eup %1590 }
 0x49e   : > { %v688_v43 = vmul.f32 %v1591_v42, %v681_v36  ;;  %v1593_v46 = vpop.eup %1592  ;;  %v1010_v51 = vpop.xlane.xlu0 %1009 }
 0x49f   : > { %1596 = vrcp.f32 %v1010_v51 }
 0x4a0   : > { %v689_v44 = vpack.c.bf16 %v688_v43, %v688_v43 }
 0x4a1   : > { %v1595_v54 = vpop.eup %1594 }
 0x4a2   : > { %691 = vst.msk [vmem:[#allocation4] sm:$0xf] %vm690_vm5, %v689_v44 }
 0x4a9   : > { %v1597_v63 = vpop.eup %1596 }
 0x4d5   : > { %v803_v47 = vpop.f32.mrb[12].mxu0 }
 0x4d6   : > { %v810_v48 = vmul.f32 %v1593_v46, %v803_v47  ;;  %v1429_v49 = vpop.f32.mrb[13].mxu0 }
 0x4d7   : > { %v806_v50 = vpop.f32.mrb[14].mxu0 }
 0x4d8   : > { %v1352_v52 = vpack.c.bf16 %v810_v48, %v810_v48  ;;  %v1430_v53 = vpop.f32.mrb[15].mxu0 }
 0x4da   : > { %815 = vrot.lane.b32.xlu0 %v1352_v52, %s1850_s13 }
 0x4dd   : > { %v930_v55 = vpop.f32.mrb[16].mxu0 }
 0x4de   : > { %v937_v57 = vmul.f32 %v1595_v54, %v930_v55  ;;  %v1441_v58 = vpop.f32.mrb[17].mxu0 }
 0x4df   : > { %v933_v59 = vpop.f32.mrb[18].mxu0 }
 0x4e0   : > { %v1353_v61 = vpack.c.bf16 %v937_v57, %v937_v57  ;;  %v1442_v62 = vpop.f32.mrb[19].mxu0 }
 0x4e2   : > { %942 = vrot.lane.b32.xlu1 %v1353_v61, %s1851_s10 }
 0x4e5   : > { %v1057_v1 = vpop.f32.mrb[20].mxu0 }
 0x4e6   : > { %v1064_v2 = vmul.f32 %v1597_v63, %v1057_v1  ;;  %v1453_v3 = vpop.f32.mrb[21].mxu0 }
 0x4e7   : > { %v1060_v4 = vpop.f32.mrb[22].mxu0 }
 0x4e8   : > { %v1354_v5 = vpack.c.bf16 %v1064_v2, %v1064_v2  ;;  %v1454_v6 = vpop.f32.mrb[23].mxu0 }
 0x4ea   : > { %1069 = vrot.lane.b32.xlu1 %v1354_v5, %s1852_s17 }
 0x54c   : > { %v816_v7 = vpop.permute.xlu0 %815 }
 0x54d   : > { %819 = vst.msk [vmem:[#allocation4] sm:$0xf] %vm818_vm6, %v816_v7 }
 0x554   : > { %v943_v8 = vpop.permute.xlu1 %942 }
 0x555   : > { %946 = vst.msk [vmem:[#allocation4] sm:$0xf] %vm945_vm7, %v943_v8 }
 0x55c   : > { %v1070_v0 = vpop.permute.xlu1 %1069 }
 0x55d   : > { %1073 = vst.msk [vmem:[#allocation4] sm:$0xf] %vm1072_vm8, %v1070_v0 }
 0x564   : > { %v1074_v9 = vld [vmem:[#allocation4] sm:$0xf] }
 0x565   : > { %1460 = vmatmul.mubr.msk.bf16.vlgmr.msra.gmra.mrb[20].mxu1 %vm407_vm1, %v1074_v9 }
 0x638   : > { %v1135_v11 = vpop.f32.mrb[20].mxu1 }
 0x639   : > { %v1136_v12 = vadd.f32 %v1344_v10, %v1135_v11  ;;  %v1461_v13 = vpop.f32.mrb[21].mxu1 }
 0x63a   : > { %v1138_v14 = vpop.f32.mrb[22].mxu1 }
 0x63b   : > { %v1462_v15 = vpop.f32.mrb[23].mxu1  ;;  %1141 = vst.msk [vmem:[%s383_s3] sm:$0xff] %vm407_vm1, %v1136_v12 }
 0x63c   : > { %1757 = shalt.err (!%p1754_p8)
}
 0x63d   : > { %s1758_s20 = scalar_lea.hbm %s2247_s7, 128  ;;  %s1762_s15 = scalar_lea.hbm %s2303_s6, 256 }
 0x63e   : > { %p1759_p0 = scmp.ne.s32.totalorder %s2247_s7, %s1758_s20  ;;  %p1763_p7 = scmp.lt.u32.totalorder %s2247_s7, %s2303_s6 }
 0x63f   : > { %p1764_p13 = scmp.lt.u32.totalorder %s1762_s15, %s1758_s20  ;;  %p1766_p2 = scmp.lt.u32.totalorder %s1758_s20, %s2247_s7 }
 0x640   : > { %p1760_p5 = pnand %p1759_p0, %p2353_p4 }
 0x641   : > { %p1765_p9 = por %p1764_p13, %p1763_p7 }
 0x642   : > { %p1761_p12 = pneg %p1760_p5 }
 0x643   : > { %p1767_p1 = por %p1766_p2, %p1765_p9 }
 0x645   : > { %p1768_p3 = pnand %p1767_p1, %p1761_p12 }
 0x647   : > { %1771 = shalt.err (!%p1768_p3)
}
 0x648   : > { %1477 = dma.vmem_to_hbm [thread:$0]  (%p2353_p4), %s2249_s28, 128, %s2247_s7, %s1143_s24  }
 0x649 PF: > { %s2354_s10 = sld [smem:[#allocation20_spill]]  ;;  %s1169_s17 = sand.u32 1, %s1814_s21  }
 0x64a   : > { %p2355_p11 = scmp.ne.s32.totalorder %s2328_s30, 0  ;;  %s1170_s16 = scalar_lea.sflag [#allocation7], %s1169_s17 }
 0x64f   : > { %p2356_p10 = scmp.ge.s32.totalorder %s2354_s10, 2 }
 0x651   : > { %p1497_p6 = pnand %p2356_p10, %p2355_p11 }
 0x653   : > { %1809 = dma.done.wait (!%p1497_p6), %s1170_s16, 128  }
 0x654   : > { %1811 = vsyncadd (!%p1497_p6), %s1170_s16, 4294967168  ;;  %s26_s26 = sadd.s32 1, %s2354_s10   ;;  %s2357_s14 = sld [smem:[#allocation22_spill]] }
 0x655   : > { %p23_p8 = scmp.ge.s32.totalorder %s26_s26, 4   ;;  %s2358_s24 = sld [smem:[#allocation19_spill]] }
 0x656   : > { %s2359_s25 = sld [smem:[#allocation21_spill]]  ;;  %s2360_s21 = smov %s1818_s22 }
 0x657   : > { %s2361_s22 = smov %s1822_s23  ;;  %25 = sbr.rel (!%p23_p8) target bundleno = 13 (0xd), region = 121 }
 0x65a   : > { %s2362_s23 = smov %s2357_s14 }
 0x65e   :  { %1175 = vsyncpa [#allocation6], 1 }
 0x65f   :  { %1177 = vsyncpa [#allocation6 + $0x1], 1 }
 0x660   :  { %1178 = vsyncpa [#allocation9], 1 }
 0x661   :  { %1180 = vsyncpa [#allocation9 + $0x1], 1 }
 0x662   :  { %1181 = vsyncpa [#allocation12], 1 }
 0x663   :  { %1182 = vsyncpa [#allocation7], 1 }
 0x664   :  { %1184 = vsyncpa [#allocation7 + $0x1], 1 }

</bundles_post_ra>
